<compile_context>
chip_gen: v7x
topology: tpu7x:2x2x1
jax: 0.10.0
libtpu: 0.0.40
codegen_flags: <defaults>
</compile_context>

<pallas_src>
import jax
import jax.numpy as jnp
from jax import lax
from jax.experimental import pallas as pl
from jax.experimental.pallas import tpu as pltpu


def _fused_kernel(x_ref, w_ref, b_ref, o_ref):
    """out = windowed_sum(x_flat) @ W_eff + b_eff.

    x_ref : (N, C_in*L)               float32  (flattened input, lane-dense)
    w_ref : (C_in*L - L_out + 1, F)   float32  (pre-folded conv+mean+fc weight,
                                                zero-padded at channel seams)
    b_ref : (1, F)                    float32  (pre-folded bias)
    o_ref : (N, F)                    float32
    """
    x = x_ref[...]                                   # (N, C_in*L)
    m_rows = w_ref.shape[0]                          # C_in*L - L_out + 1
    l_out = x.shape[1] - m_rows + 1

    # Sliding-window sum over the length axis: L_out-1 static lane-shifted adds.
    t = x[:, 0:m_rows]
    for l in range(1, l_out):                        # unrolled (L_out - 1 == 1 here)
        t = t + x[:, l:l + m_rows]

    out = jnp.dot(t, w_ref[...], preferred_element_type=jnp.float32) + b_ref[...]
    o_ref[...] = out.astype(o_ref.dtype)


def prepare_params(conv_w, conv_b, fc_w, fc_b, L):
    """One-time fold of Conv1d + mean(-1) + Linear into a single affine map.

    conv_w: (C_out, C_in, K); conv_b: (C_out,); fc_w: (F_out, C_out);
    fc_b: (F_out,).  Returns (W_eff (C_in*L - L_out + 1, F_out), b_eff (1, F_out)).
    """
    C_out, C_in, K = conv_w.shape
    F_out = fc_w.shape[0]
    L_out = L - K + 1

    # W_small[(c,k), f] = (1/L_out) * sum_co conv_w[co, c, k] * fc_w[f, co]
    wc_flat = conv_w.reshape(C_out, C_in * K).astype(jnp.float32)      # [co, c*K+k]
    w_small = (wc_flat.T @ fc_w.T.astype(jnp.float32)) / float(L_out)  # (C_in*K, F_out)

    # Scatter into the padded layout that matches the flat windowed sum of x:
    # row index c*L + k carries W_small[c*K + k]; channel-seam rows stay zero.
    m_rows = C_in * L - L_out + 1
    idx = (jnp.arange(C_in)[:, None] * L + jnp.arange(K)[None, :]).reshape(-1)
    w_eff = jnp.zeros((m_rows, F_out), jnp.float32).at[idx].set(w_small)

    b_eff = (conv_b.astype(jnp.float32) @ fc_w.T.astype(jnp.float32)
             + fc_b.astype(jnp.float32)).reshape(1, F_out)
    return w_eff, b_eff


@jax.jit
def conv_mean_fc(x, w_eff, b_eff):
    """x: (N, C_in, L) float32; w_eff/b_eff from prepare_params -> (N, F_out)."""
    N, C_in, L = x.shape
    m_rows, F_out = w_eff.shape
    x_flat = x.reshape(N, C_in * L).astype(jnp.float32)   # contiguous, metadata-only

    return pl.pallas_call(
        _fused_kernel,
        out_shape=jax.ShapeDtypeStruct((N, F_out), jnp.float32),
        grid=(1,),
        in_specs=[
            pl.BlockSpec((N, C_in * L), lambda i: (0, 0)),
            pl.BlockSpec((m_rows, F_out), lambda i: (0, 0)),
            pl.BlockSpec((1, F_out), lambda i: (0, 0)),
        ],
        out_specs=pl.BlockSpec((N, F_out), lambda i: (0, 0)),
    )(x_flat, w_eff, b_eff)


def _reference(x, conv_w, conv_b, fc_w, fc_b):
    """Pure-JAX reference mirroring the PyTorch forward."""
    y = lax.conv_general_dilated(
        x, conv_w, window_strides=(1,), padding="VALID",
        dimension_numbers=("NCH", "OIH", "NCH"))
    y = y + conv_b[None, :, None]
    m = y.mean(-1)
    return m @ fc_w.T + fc_b


if __name__ == "__main__":
    # Shapes from the module: x = randn(10, 3, 4), Conv1d(3, 30, 3).
    N, C_in, L = 10, 3, 4
    C_out, K = 30, 3
    F_out = 30            # fc out_features (in_features adjusted to 30, see TODO above)

    key = jax.random.PRNGKey(0)
    k_x, k_wc, k_bc, k_wf, k_bf = jax.random.split(key, 5)

    x = jax.random.normal(k_x, (N, C_in, L), dtype=jnp.float32)
    conv_w = jax.random.normal(k_wc, (C_out, C_in, K), dtype=jnp.float32) * 0.1
    conv_b = jax.random.normal(k_bc, (C_out,), dtype=jnp.float32) * 0.1
    fc_w = jax.random.normal(k_wf, (F_out, C_out), dtype=jnp.float32) * 0.1
    fc_b = jax.random.normal(k_bf, (F_out,), dtype=jnp.float32) * 0.1

    # One-time parameter fold (hoisted out of the per-call path).
    w_eff, b_eff = prepare_params(conv_w, conv_b, fc_w, fc_b, L)
    w_eff, b_eff = jax.block_until_ready((w_eff, b_eff))

    out = conv_mean_fc(x, w_eff, b_eff)
    out = jax.block_until_ready(out)

    ref = _reference(x, conv_w, conv_b, fc_w, fc_b)
    assert out.shape == (N, F_out), out.shape
    assert jnp.allclose(out, ref, atol=1e-4, rtol=1e-4), "mismatch vs reference"

    print("KERNEL_OK")
</pallas_src>

<mosaic_0001>
module attributes {stable_mosaic.version = 11 : i64} {
  func.func @_fused_kernel(%arg0: i32, %arg1: memref<10x12xf32, #tpu.memory_space<vmem>>, %arg2: memref<11x30xf32, #tpu.memory_space<vmem>>, %arg3: memref<1x30xf32, #tpu.memory_space<vmem>>, %arg4: memref<10x30xf32, #tpu.memory_space<vmem>>) attributes {dimension_semantics = [#tpu.dimension_semantics<arbitrary>], iteration_bounds = array<i64: 1>, scalar_prefetch = 0 : i64, scratch_operands = 0 : i64, tpu.core_type = #tpu.core_type<tc>, window_params = [{pipeline_mode = #tpu.pipeline_mode<synchronous>, transform_indices = @transform_0, window_bounds = array<i64: 10, 12>}, {pipeline_mode = #tpu.pipeline_mode<synchronous>, transform_indices = @transform_1, window_bounds = array<i64: 11, 30>}, {pipeline_mode = #tpu.pipeline_mode<synchronous>, transform_indices = @transform_2, window_bounds = array<i64: 1, 30>}, {pipeline_mode = #tpu.pipeline_mode<synchronous>, transform_indices = @transform_3, window_bounds = array<i64: 10, 30>}]} {
    %c0 = arith.constant 0 : index
    %c0_0 = arith.constant 0 : index
    %0 = vector.load %arg1[%c0, %c0_0] : memref<10x12xf32, #tpu.memory_space<vmem>>, vector<10x12xf32>
    %1 = vector.extract_strided_slice %0 {offsets = [0, 0], sizes = [10, 11], strides = [1, 1]} : vector<10x12xf32> to vector<10x11xf32>
    %2 = vector.extract_strided_slice %0 {offsets = [0, 1], sizes = [10, 11], strides = [1, 1]} : vector<10x12xf32> to vector<10x11xf32>
    %3 = arith.addf %1, %2 : vector<10x11xf32>
    %c0_1 = arith.constant 0 : index
    %c0_2 = arith.constant 0 : index
    %4 = vector.load %arg2[%c0_1, %c0_2] : memref<11x30xf32, #tpu.memory_space<vmem>>, vector<11x30xf32>
    %cst = arith.constant dense<0.000000e+00> : vector<10x30xf32>
    %5 = tpu.matmul %3, %4, %cst {dimension_numbers = #tpu.dot_dimension_numbers<[1], [0], [0], [1], [0, 0, 1, 1], [], []>} : vector<10x11xf32>, vector<11x30xf32>, vector<10x30xf32> -> vector<10x30xf32>
    %c0_3 = arith.constant 0 : index
    %c0_4 = arith.constant 0 : index
    %6 = vector.load %arg3[%c0_3, %c0_4] : memref<1x30xf32, #tpu.memory_space<vmem>>, vector<1x30xf32>
    %7 = vector.broadcast %6 : vector<1x30xf32> to vector<10x30xf32>
    %8 = arith.addf %5, %7 : vector<10x30xf32>
    %c0_5 = arith.constant 0 : index
    %c0_6 = arith.constant 0 : index
    %9 = vector.load %arg4[%c0_5, %c0_6] : memref<10x30xf32, #tpu.memory_space<vmem>>, vector<10x30xf32>
    tpu.vector_store %arg4[%c0_5, %c0_6], %8 {strides = array<i32>} : memref<10x30xf32, #tpu.memory_space<vmem>>, vector<10x30xf32>,
    return
  }
  func.func @transform_0(%arg0: i32) -> (i32, i32) {
    %c0_i32 = arith.constant 0 : i32
    %c0_i32_0 = arith.constant 0 : i32
    %c0_i32_1 = arith.constant 0 : i32
    return %c0_i32, %c0_i32_0 : i32, i32
  }
  func.func @transform_1(%arg0: i32) -> (i32, i32) {
    %c0_i32 = arith.constant 0 : i32
    %c0_i32_0 = arith.constant 0 : i32
    %c0_i32_1 = arith.constant 0 : i32
    return %c0_i32, %c0_i32_0 : i32, i32
  }
  func.func @transform_2(%arg0: i32) -> (i32, i32) {
    %c0_i32 = arith.constant 0 : i32
    %c0_i32_0 = arith.constant 0 : i32
    %c0_i32_1 = arith.constant 0 : i32
    return %c0_i32, %c0_i32_0 : i32, i32
  }
  func.func @transform_3(%arg0: i32) -> (i32, i32) {
    %c0_i32 = arith.constant 0 : i32
    %c0_i32_0 = arith.constant 0 : i32
    %c0_i32_1 = arith.constant 0 : i32
    return %c0_i32, %c0_i32_0 : i32, i32
  }
}

</mosaic_0001>

<bundles_post_ra>
// kernel: conv_mean_fc.1
= control target key start
LH: loop header
LB: loop body
LE: loop exit
PB: predicated region body
PF: predicated region fallthrough
CT: control target
= control target key end

     0   :  { %vm43_vm0 = vcmask 1042432   ;;  %s192_s16 = smov 127   ;;  %s244_s0 = inlined_call_operand.vmem [shape: f32[10,12], index: 0, kind: input, shape index: {}]   ;;  %s245_s1 = inlined_call_operand.vmem [shape: f32[11,30], index: 1, kind: input, shape index: {}]   ;;  %s246_s2 = inlined_call_operand.vmem [shape: f32[1,30], index: 2, kind: input, shape index: {}]   ;;  %s247_s3 = inlined_call_operand.hbm [shape: f32[10,30], index: 3, kind: output, shape index: {}]  }
   0x1   :  { %v15_v0 = vld [vmem:[%s244_s0] sm:$0xff]  ;;  %v28_v2 = vld [vmem:[%s245_s1 + $0x8] sm:$0x7] }
   0x2   :  { %v27_v1 = vld [vmem:[%s245_s1] sm:$0xff]  ;;  %19 = vrot.lane.b32.xlu0 %v15_v0, %s192_s16 }
   0x3   :  { %8 = vsyncpa [#allocation3], 0  ;;  %v16_v3 = vld [vmem:[%s244_s0 + $0x8] sm:$0x3]  ;;  %v157_v4 = vpack.c.bf16 %v28_v2, %v27_v1  ;;  %vm193_vm1 = vmmov 1   ;;  %vm36_vm3 = vcmask 89088  }
   0x4   :  { %vm158_vm2 = vmpackc.low %vm43_vm0, %vm193_vm1  ;;  %v142_v9 = vld [vmem:[%s246_s2] ss:$0 sm:$0xff]  ;;  %s194_s22 = smov [#allocation2]   ;;  %vm124_vm4 = vcmask 238592   ;;  %vm122_vm5 = vcmask 244736  }
   0x5   :  { %159 = vmatprep.subr.msk.bf16.mxu0 %vm158_vm2, %v157_v4  ;;  %s131_s23 = sshll.u32 %s194_s22, 4  ;;  %s132_s23 = int_to_ptr.vmem [resolvable:$true] %s131_s23 }
   0x6   :  { %21 = vrot.lane.b32.xlu0 %v16_v3, %s192_s16  ;;  %162 = vmatpush3.bf16.msk.msra.mxu0 %vm158_vm2, %v157_v4  ;;  %s168_s0 = scalar_lea.vmem %s132_s23, 256  ;;  %p173_p1 = scmp.lt.s32.totalorder %s132_s23, %s132_s23 }
   0x7   :  { %p169_p0 = scmp.ne.s32.totalorder %s132_s23, %s168_s0  ;;  %p174_p2 = scmp.lt.s32.totalorder %s168_s0, %s168_s0 }
   0x9   :  { %p175_p3 = por %p174_p2, %p173_p1 }
   0xb   :  { %p176_p4 = pnand %p175_p3, %p169_p0 }
  0x74   :  { %v20_v5 = vpop.permute.xlu0 %19 }
  0x75   :  { %v25_v6 = vadd.f32 %v20_v5, %v15_v0 }
  0x77   :  { %154 = vmatprep.mubr.msk.f32.mxu0 %vm36_vm3, %v25_v6 }
  0x78   :  { %v22_v7 = vpop.permute.xlu0 %21 }
  0x79   :  { %v26_v8 = vadd.f32 %v22_v7, %v16_v3 }
  0x7b   :  { %155 = vmatmul.mubr.msk.f32.vlgmr.msra.gmra.mrb[0].mxu0 %vm36_vm3, %v26_v8 }
 0x14e   :  { %v156_v10 = vpop.f32.mrb[0].mxu0 }
 0x14f   :  { %v119_v11 = vadd.f32 %v156_v10, %v142_v9  ;;  %v113_v12 = vpop.f32.mrb[1].mxu0 }
 0x150   :  { %v114_v13 = vadd.f32 %v142_v9, %v113_v12 }
 0x151   :  { %125 = vst.msk [vmem:[#allocation2 + $0x8] sm:$0x3] %vm124_vm4, %v119_v11 }
 0x152   :  { %123 = vst.msk [vmem:[#allocation2] sm:$0xff] %vm122_vm5, %v114_v13 }
 0x153   :  { %179 = shalt.err (!%p176_p4)
}
 0x154   :  { %s180_s25 = scalar_lea.hbm %s247_s3, 256 }
 0x155   :  { %p181_p5 = scmp.ne.s32.totalorder %s247_s3, %s180_s25  ;;  %p184_p6 = scmp.lt.u32.totalorder %s180_s25, %s247_s3 }
 0x157   :  { %p186_p7 = pnand %p184_p6, %p181_p5 }
 0x159   :  { %189 = shalt.err (!%p186_p7)
}
 0x15a   :  { %s195_s30 = smov 128   ;;  %s196_s4 = smov 8  }
 0x15b   :  { %137 = dma.vmem_to_hbm [thread:$0]  %s132_s23, 256, %s247_s3, [#allocation3], %s195_s30, %s195_s30, %s196_s4  }
 0x15c   :  { %190 = dma.done.wait [#allocation3], 256  }
 0x15d   :  { %191 = vsyncadd [#allocation3], 4294967040 }
 0x15e   :  { %141 = vsyncpa [#allocation3], 1 }

</bundles_post_ra>
